<compile_context>
chip_gen: v7x
topology: tpu7x:2x2x1
jax: 0.10.0
libtpu: 0.0.40
codegen_flags: <defaults>
</compile_context>

<pallas_src>
import jax
import jax.numpy as jnp
from jax.experimental import pallas as pl
from jax.experimental.pallas import tpu as pltpu

EPS = 1e-5

# Row layout of the packed per-feature parameter block (8 sublanes, f32).
_ROW_U, _ROW_G1, _ROW_B1, _ROW_G2, _ROW_B2 = 0, 1, 2, 3, 4


def _round_up(n, m):
    return (n + m - 1) // m * m


def _pick_block_h(H):
    # 256-wide N tiles fill the v6e/v7x 256x256 MXU, but only once H is big
    # enough; keep 128 for small H so the "parallel" H grid still has >= 2
    # steps (v7x has 2 TensorCores per chip).
    return 256 if _round_up(H, 128) >= 512 else 128


def _indrnn_cell_kernel(x_ref, h_ref, w_ref, p_ref, out_ref):
    # x: (B, D_in_p) whole batch (mxu_dtype); w: (D_in_p, block_h)
    # pre-transposed weight tile; h: (B, block_h) f32 hidden tile;
    # p: (8, block_h) f32 packed per-feature params; out: (B, block_h).
    x = x_ref[...]
    w = w_ref[...]

    # ---- Linear (bias omitted: exactly cancelled by BN1's batch-mean
    # subtraction in train mode).  Contract x's last dim with w's first dim
    # -> no in-kernel transpose; f32 accumulation on the MXU.
    lin = jax.lax.dot_general(
        x, w, dimension_numbers=(((1,), (0,)), ((), ())),
        preferred_element_type=jnp.float32)

    p = p_ref[...]
    u = p[_ROW_U:_ROW_U + 1]
    g1 = p[_ROW_G1:_ROW_G1 + 1]
    be1 = p[_ROW_B1:_ROW_B1 + 1]
    g2 = p[_ROW_G2:_ROW_G2 + 1]
    be2 = p[_ROW_B2:_ROW_B2 + 1]

    inv_b = jnp.float32(1.0 / lin.shape[0])

    # ---- BatchNorm1d #1 (training mode, biased variance), folded scale/shift.
    s1 = jnp.sum(lin, axis=0, keepdims=True)
    sq1 = jnp.sum(lin * lin, axis=0, keepdims=True)
    mu1 = s1 * inv_b
    var1 = jnp.maximum(sq1 * inv_b - mu1 * mu1, 0.0)   # clamp cancellation
    scale1 = g1 * jax.lax.rsqrt(var1 + EPS)
    shift1 = be1 - mu1 * scale1

    # ---- Recurrence: hidden @ diag(u) == hidden * u (elementwise, VPU).
    rec = h_ref[...] * u

    # ---- ReLU
    act = jnp.maximum(lin * scale1 + shift1 + rec, 0.0)

    # ---- BatchNorm1d #2, folded scale/shift.
    s2 = jnp.sum(act, axis=0, keepdims=True)
    sq2 = jnp.sum(act * act, axis=0, keepdims=True)
    mu2 = s2 * inv_b
    var2 = jnp.maximum(sq2 * inv_b - mu2 * mu2, 0.0)
    scale2 = g2 * jax.lax.rsqrt(var2 + EPS)
    shift2 = be2 - mu2 * scale2

    out_ref[...] = (act * scale2 + shift2).astype(out_ref.dtype)


def prepare_indrnn_params(w, b, u_diag, gamma1, beta1, gamma2, beta2,
                          *, block_h=None, mxu_dtype=jnp.bfloat16):
    """One-time parameter prep: pad / cast / transpose / pack.

    w: (H, D_in) in nn.Linear layout; b: (H,) i2h bias (dropped -- exactly
    cancelled by BN1's batch-mean subtraction in train mode); u_diag: (H,)
    diagonal of the recurrent matrix; gamma*/beta*: (H,).
    """
    H, d_in = w.shape
    if block_h is None:
        block_h = _pick_block_h(H)
    assert block_h % 128 == 0
    d_in_p = _round_up(d_in, 128)
    h_p = _round_up(H, block_h)

    del b  # cancelled by BN1's mean subtraction (train mode only)

    # Pre-transposed, padded, cast weight (D_in_p, H_p): done once, not per call.
    w_t = jnp.pad(w, ((0, h_p - H), (0, d_in_p - d_in))).T.astype(mxu_dtype)

    def row(v):
        return jnp.pad(v.astype(jnp.float32), (0, h_p - H))

    # Pack the 5 per-feature vectors into one (8, H_p) f32 block: one DMA per
    # grid step instead of five tiny ones.
    packed = jnp.zeros((8, h_p), jnp.float32)
    packed = packed.at[_ROW_U].set(row(u_diag))
    packed = packed.at[_ROW_G1].set(row(gamma1))
    packed = packed.at[_ROW_B1].set(row(beta1))
    packed = packed.at[_ROW_G2].set(row(gamma2))
    packed = packed.at[_ROW_B2].set(row(beta2))

    return dict(w_t=w_t, packed=packed, H=H, d_in=d_in, block_h=block_h,
                h_p=h_p, d_in_p=d_in_p, mxu_dtype=mxu_dtype)


def indrnn_cell(x, hidden, params, *, out_dtype=jnp.float32):
    """IndRNNCell forward.  x: (B, D_in), hidden: (B, H) -> (B, H)."""
    B, d_in = x.shape
    H = params["H"]
    assert d_in == params["d_in"]
    assert hidden.shape == (B, H)
    # PyTorch BatchNorm1d raises for batch size 1 in train mode.
    assert B > 1, "BatchNorm1d in train mode requires batch size > 1"

    block_h = params["block_h"]
    h_p = params["h_p"]
    d_in_p = params["d_in_p"]
    mxu_dtype = params["mxu_dtype"]

    # Only the activations are padded / cast per call (weights were prepped once).
    x_p = jnp.pad(x, ((0, 0), (0, d_in_p - d_in))).astype(mxu_dtype)
    h_pad = jnp.pad(hidden, ((0, 0), (0, h_p - H))).astype(jnp.float32)

    # VMEM budget from actual buffer math (2x headroom, 16 MiB floor, capped
    # well under v7x's 64 MiB physical VMEM).
    mxu_b = jnp.dtype(mxu_dtype).itemsize
    out_b = jnp.dtype(out_dtype).itemsize
    vmem_bytes = (
        2 * d_in_p * block_h * mxu_b      # weight tile, double-buffered
        + 1 * B * d_in_p * mxu_b          # x: grid-invariant, single buffer
        + 2 * B * block_h * 4             # hidden tile, double-buffered
        + 2 * B * block_h * out_b         # out tile, double-buffered
        + 1 * 8 * block_h * 4)            # packed params, single buffer
    vmem_limit = int(min(max(2 * vmem_bytes + (4 << 20), 16 << 20), 56 << 20))

    grid = (h_p // block_h,)
    in_specs = [
        # x is grid-invariant -> single buffer saves VMEM (matters on v7x).
        pl.BlockSpec((B, d_in_p), lambda i: (0, 0),
                     pipeline_mode=pl.Buffered(1)),
        pl.BlockSpec((B, block_h), lambda i: (0, i)),        # hidden tile
        pl.BlockSpec((d_in_p, block_h), lambda i: (0, i)),   # weight tile
        pl.BlockSpec((8, block_h), lambda i: (0, i),
                     pipeline_mode=pl.Buffered(1)),          # packed params
    ]
    out_specs = pl.BlockSpec((B, block_h), lambda i: (0, i))

    out_p = pl.pallas_call(
        _indrnn_cell_kernel,
        out_shape=jax.ShapeDtypeStruct((B, h_p), out_dtype),
        grid_spec=pltpu.PrefetchScalarGridSpec(
            num_scalar_prefetch=0,
            grid=grid,
            in_specs=in_specs,
            out_specs=out_specs),
        compiler_params=pltpu.CompilerParams(
            dimension_semantics=("parallel",),
            vmem_limit_bytes=vmem_limit),
    )(x_p, h_pad, params["w_t"], params["packed"])

    return out_p[:, :H]


if __name__ == "__main__":
    key = jax.random.PRNGKey(0)
    k_x, k_h, k_w, k_b, k_u = jax.random.split(key, 5)

    B, D_IN, H = 8, 16, 32          # batch, inputDim, hiddenDim

    x = jax.random.normal(k_x, (B, D_IN), dtype=jnp.float32)
    hidden = jax.random.normal(k_h, (B, H), dtype=jnp.float32)

    # nn.Linear(inputDim, hiddenDim): weight (H, D_IN), bias (H,)
    bound = 1.0 / jnp.sqrt(D_IN)
    w = jax.random.uniform(k_w, (H, D_IN), minval=-bound, maxval=bound,
                           dtype=jnp.float32)
    b = jax.random.uniform(k_b, (H,), minval=-bound, maxval=bound,
                           dtype=jnp.float32)

    # self.u = Parameter(diag(randn(H))): kernel only needs the diagonal.
    u_diag = jax.random.normal(k_u, (H,), dtype=jnp.float32)

    # BatchNorm1d default affine params: gamma=1, beta=0.
    gamma1 = jnp.ones((H,), jnp.float32)
    beta1 = jnp.zeros((H,), jnp.float32)
    gamma2 = jnp.ones((H,), jnp.float32)
    beta2 = jnp.zeros((H,), jnp.float32)

    # Reference: exact PyTorch train-mode forward, WITH the i2h bias and the
    # full H x H diagonal-U matmul.
    u_full = jnp.diag(u_diag)
    lin = x @ w.T + b
    m1 = lin.mean(0)
    v1 = ((lin - m1) ** 2).mean(0)
    bn1 = (lin - m1) / jnp.sqrt(v1 + EPS) * gamma1 + beta1
    act = jnp.maximum(bn1 + hidden @ u_full, 0.0)
    m2 = act.mean(0)
    v2 = ((act - m2) ** 2).mean(0)
    ref = (act - m2) / jnp.sqrt(v2 + EPS) * gamma2 + beta2

    # f32 MXU path: tight tolerance.
    params_f32 = prepare_indrnn_params(w, b, u_diag, gamma1, beta1, gamma2,
                                       beta2, mxu_dtype=jnp.float32)
    out_f32 = indrnn_cell(x, hidden, params_f32)
    jax.block_until_ready(out_f32)
    assert out_f32.shape == (B, H), out_f32.shape
    assert jnp.allclose(out_f32, ref, atol=1e-4, rtol=1e-4), "f32 mismatch"

    # Default bf16 MXU path (params prepped once): loosened tolerance.
    params_bf16 = prepare_indrnn_params(w, b, u_diag, gamma1, beta1, gamma2,
                                        beta2)
    out_bf16 = indrnn_cell(x, hidden, params_bf16)
    jax.block_until_ready(out_bf16)
    assert out_bf16.shape == (B, H), out_bf16.shape
    assert jnp.allclose(out_bf16, ref, atol=5e-2, rtol=5e-2), "bf16 mismatch"

    print("KERNEL_OK")
</pallas_src>

<mosaic_0001>
module attributes {stable_mosaic.version = 11 : i64} {
  func.func @_indrnn_cell_kernel(%arg0: i32, %arg1: memref<8x128xf32, #tpu.memory_space<vmem>>, %arg2: memref<8x128xf32, #tpu.memory_space<vmem>>, %arg3: memref<128x128xf32, #tpu.memory_space<vmem>>, %arg4: memref<8x128xf32, #tpu.memory_space<vmem>>, %arg5: memref<8x128xf32, #tpu.memory_space<vmem>>) attributes {dimension_semantics = [#tpu.dimension_semantics<parallel>], iteration_bounds = array<i64: 1>, scalar_prefetch = 0 : i64, scratch_operands = 0 : i64, tpu.core_type = #tpu.core_type<tc>, window_params = [{pipeline_mode = #tpu.pipeline_mode<synchronous>, transform_indices = @transform_0, window_bounds = array<i64: 8, 128>}, {transform_indices = @transform_1, window_bounds = array<i64: 8, 128>}, {transform_indices = @transform_2, window_bounds = array<i64: 128, 128>}, {pipeline_mode = #tpu.pipeline_mode<synchronous>, transform_indices = @transform_3, window_bounds = array<i64: 8, 128>}, {transform_indices = @transform_4, window_bounds = array<i64: 8, 128>}]} {
    %c0 = arith.constant 0 : index
    %c0_0 = arith.constant 0 : index
    %0 = vector.load %arg1[%c0, %c0_0] : memref<8x128xf32, #tpu.memory_space<vmem>>, vector<8x128xf32>
    %c0_1 = arith.constant 0 : index
    %c0_2 = arith.constant 0 : index
    %1 = vector.load %arg3[%c0_1, %c0_2] : memref<128x128xf32, #tpu.memory_space<vmem>>, vector<128x128xf32>
    %cst = arith.constant dense<0.000000e+00> : vector<8x128xf32>
    %2 = tpu.matmul %0, %1, %cst {dimension_numbers = #tpu.dot_dimension_numbers<[1], [0], [0], [1], [0, 0, 1, 1], [], []>} : vector<8x128xf32>, vector<128x128xf32>, vector<8x128xf32> -> vector<8x128xf32>
    %c0_3 = arith.constant 0 : index
    %c0_4 = arith.constant 0 : index
    %3 = vector.load %arg4[%c0_3, %c0_4] : memref<8x128xf32, #tpu.memory_space<vmem>>, vector<8x128xf32>
    %4 = vector.extract_strided_slice %3 {offsets = [0, 0], sizes = [1, 128], strides = [1, 1]} : vector<8x128xf32> to vector<1x128xf32>
    %5 = vector.extract_strided_slice %3 {offsets = [1, 0], sizes = [1, 128], strides = [1, 1]} : vector<8x128xf32> to vector<1x128xf32>
    %6 = vector.extract_strided_slice %3 {offsets = [2, 0], sizes = [1, 128], strides = [1, 1]} : vector<8x128xf32> to vector<1x128xf32>
    %7 = vector.extract_strided_slice %3 {offsets = [3, 0], sizes = [1, 128], strides = [1, 1]} : vector<8x128xf32> to vector<1x128xf32>
    %8 = vector.extract_strided_slice %3 {offsets = [4, 0], sizes = [1, 128], strides = [1, 1]} : vector<8x128xf32> to vector<1x128xf32>
    %cst_5 = arith.constant dense<0.000000e+00> : vector<128xf32>
    %9 = vector.multi_reduction <add>, %2, %cst_5 [0] : vector<8x128xf32> to vector<128xf32>
    %10 = vector.shape_cast %9 : vector<128xf32> to vector<1x128xf32>
    %11 = arith.mulf %2, %2 : vector<8x128xf32>
    %cst_6 = arith.constant dense<0.000000e+00> : vector<128xf32>
    %12 = vector.multi_reduction <add>, %11, %cst_6 [0] : vector<8x128xf32> to vector<128xf32>
    %13 = vector.shape_cast %12 : vector<128xf32> to vector<1x128xf32>
    %cst_7 = arith.constant 1.250000e-01 : f32
    %14 = vector.broadcast %cst_7 : f32 to vector<1x128xf32>
    %15 = arith.mulf %10, %14 : vector<1x128xf32>
    %cst_8 = arith.constant 1.250000e-01 : f32
    %16 = vector.broadcast %cst_8 : f32 to vector<1x128xf32>
    %17 = arith.mulf %13, %16 : vector<1x128xf32>
    %18 = arith.mulf %15, %15 : vector<1x128xf32>
    %19 = arith.subf %17, %18 : vector<1x128xf32>
    %cst_9 = arith.constant 0.000000e+00 : f32
    %20 = vector.broadcast %cst_9 : f32 to vector<1x128xf32>
    %21 = arith.maximumf %19, %20 : vector<1x128xf32>
    %cst_10 = arith.constant 9.99999974E-6 : f32
    %22 = vector.broadcast %cst_10 : f32 to vector<1x128xf32>
    %23 = arith.addf %21, %22 : vector<1x128xf32>
    %24 = math.rsqrt %23 : vector<1x128xf32>
    %25 = arith.mulf %5, %24 : vector<1x128xf32>
    %26 = arith.mulf %15, %25 : vector<1x128xf32>
    %27 = arith.subf %6, %26 : vector<1x128xf32>
    %c0_11 = arith.constant 0 : index
    %c0_12 = arith.constant 0 : index
    %28 = vector.load %arg2[%c0_11, %c0_12] : memref<8x128xf32, #tpu.memory_space<vmem>>, vector<8x128xf32>
    %29 = vector.broadcast %4 : vector<1x128xf32> to vector<8x128xf32>
    %30 = arith.mulf %28, %29 : vector<8x128xf32>
    %31 = vector.broadcast %25 : vector<1x128xf32> to vector<8x128xf32>
    %32 = arith.mulf %2, %31 : vector<8x128xf32>
    %33 = vector.broadcast %27 : vector<1x128xf32> to vector<8x128xf32>
    %34 = arith.addf %32, %33 : vector<8x128xf32>
    %35 = arith.addf %34, %30 : vector<8x128xf32>
    %cst_13 = arith.constant 0.000000e+00 : f32
    %36 = vector.broadcast %cst_13 : f32 to vector<8x128xf32>
    %37 = arith.maximumf %35, %36 : vector<8x128xf32>
    %cst_14 = arith.constant dense<0.000000e+00> : vector<128xf32>
    %38 = vector.multi_reduction <add>, %37, %cst_14 [0] : vector<8x128xf32> to vector<128xf32>
    %39 = vector.shape_cast %38 : vector<128xf32> to vector<1x128xf32>
    %40 = arith.mulf %37, %37 : vector<8x128xf32>
    %cst_15 = arith.constant dense<0.000000e+00> : vector<128xf32>
    %41 = vector.multi_reduction <add>, %40, %cst_15 [0] : vector<8x128xf32> to vector<128xf32>
    %42 = vector.shape_cast %41 : vector<128xf32> to vector<1x128xf32>
    %cst_16 = arith.constant 1.250000e-01 : f32
    %43 = vector.broadcast %cst_16 : f32 to vector<1x128xf32>
    %44 = arith.mulf %39, %43 : vector<1x128xf32>
    %cst_17 = arith.constant 1.250000e-01 : f32
    %45 = vector.broadcast %cst_17 : f32 to vector<1x128xf32>
    %46 = arith.mulf %42, %45 : vector<1x128xf32>
    %47 = arith.mulf %44, %44 : vector<1x128xf32>
    %48 = arith.subf %46, %47 : vector<1x128xf32>
    %cst_18 = arith.constant 0.000000e+00 : f32
    %49 = vector.broadcast %cst_18 : f32 to vector<1x128xf32>
    %50 = arith.maximumf %48, %49 : vector<1x128xf32>
    %cst_19 = arith.constant 9.99999974E-6 : f32
    %51 = vector.broadcast %cst_19 : f32 to vector<1x128xf32>
    %52 = arith.addf %50, %51 : vector<1x128xf32>
    %53 = math.rsqrt %52 : vector<1x128xf32>
    %54 = arith.mulf %7, %53 : vector<1x128xf32>
    %55 = arith.mulf %44, %54 : vector<1x128xf32>
    %56 = arith.subf %8, %55 : vector<1x128xf32>
    %57 = vector.broadcast %54 : vector<1x128xf32> to vector<8x128xf32>
    %58 = arith.mulf %37, %57 : vector<8x128xf32>
    %59 = vector.broadcast %56 : vector<1x128xf32> to vector<8x128xf32>
    %60 = arith.addf %58, %59 : vector<8x128xf32>
    %c0_20 = arith.constant 0 : index
    %c0_21 = arith.constant 0 : index
    %61 = vector.load %arg5[%c0_20, %c0_21] : memref<8x128xf32, #tpu.memory_space<vmem>>, vector<8x128xf32>
    tpu.vector_store %arg5[%c0_20, %c0_21], %60 {strides = array<i32>} : memref<8x128xf32, #tpu.memory_space<vmem>>, vector<8x128xf32>,
    return
  }
  func.func @transform_0(%arg0: i32) -> (i32, i32) {
    %c0_i32 = arith.constant 0 : i32
    %c0_i32_0 = arith.constant 0 : i32
    %c0_i32_1 = arith.constant 0 : i32
    return %c0_i32, %c0_i32_0 : i32, i32
  }
  func.func @transform_1(%arg0: i32) -> (i32, i32) {
    %c0_i32 = arith.constant 0 : i32
    %c0_i32_0 = arith.constant 0 : i32
    return %c0_i32, %arg0 : i32, i32
  }
  func.func @transform_2(%arg0: i32) -> (i32, i32) {
    %c0_i32 = arith.constant 0 : i32
    %c0_i32_0 = arith.constant 0 : i32
    return %c0_i32, %arg0 : i32, i32
  }
  func.func @transform_3(%arg0: i32) -> (i32, i32) {
    %c0_i32 = arith.constant 0 : i32
    %c0_i32_0 = arith.constant 0 : i32
    return %c0_i32, %arg0 : i32, i32
  }
  func.func @transform_4(%arg0: i32) -> (i32, i32) {
    %c0_i32 = arith.constant 0 : i32
    %c0_i32_0 = arith.constant 0 : i32
    return %c0_i32, %arg0 : i32, i32
  }
}

</mosaic_0001>

<bundles_post_ra>
// kernel: tpu_custom_call.1
= control target key start
LH: loop header
LB: loop body
LE: loop exit
PB: predicated region body
PF: predicated region fallthrough
CT: control target
= control target key end

     0   :  { %9 = vsyncpa [#allocation3], 0  ;;  %s508_s0 = inlined_call_operand.hbm [shape: f32[8,128], index: 0, kind: input, shape index: {}]   ;;  %s509_s1 = inlined_call_operand.hbm [shape: f32[8,128], index: 1, kind: input, shape index: {}]   ;;  %s510_s2 = inlined_call_operand.hbm [shape: f32[128,128], index: 2, kind: input, shape index: {}]   ;;  %s511_s3 = inlined_call_operand.vmem [shape: f32[8,128], index: 3, kind: input, shape index: {}]   ;;  %s512_s4 = inlined_call_operand.hbm [shape: f32[8,128], index: 4, kind: output, shape index: {}]  }
   0x1   :  { %10 = vsyncpa [#allocation6], 0 }
   0x2   :  { %11 = vsyncpa [#allocation4], 0  ;;  %s423_s15 = smov [#allocation5]   ;;  %s424_s17 = smov [#allocation2]  }
   0x3   :  { %s28_s16 = sshll.u32 %s423_s15, 4  ;;  %s18_s18 = sshll.u32 %s424_s17, 4  ;;  %s29_s16 = int_to_ptr.vmem [resolvable:$true] %s28_s16  ;;  %s19_s18 = int_to_ptr.vmem [resolvable:$true] %s18_s18 }
   0x4   :  { %s329_s21 = scalar_lea.hbm %s509_s1, 128 }
   0x5   :  { %p330_p0 = scmp.ne.s32.totalorder %s509_s1, %s329_s21  ;;  %p333_p1 = scmp.lt.u32.totalorder %s329_s21, %s509_s1 }
   0x7   :  { %p335_p2 = pnand %p333_p1, %p330_p0 }
   0x9   :  { %338 = shalt.err (!%p335_p2)
}
   0xa   :  { %s339_s26 = scalar_lea.vmem %s29_s16, 128  ;;  %p344_p4 = scmp.lt.s32.totalorder %s29_s16, %s29_s16 }
   0xb   :  { %p340_p3 = scmp.ne.s32.totalorder %s29_s16, %s339_s26  ;;  %p345_p5 = scmp.lt.s32.totalorder %s339_s26, %s339_s26 }
   0xd   :  { %p346_p6 = por %p345_p5, %p344_p4 }
   0xf   :  { %p347_p7 = pnand %p346_p6, %p340_p3 }
  0x11   :  { %350 = shalt.err (!%p347_p7)
}
  0x12   :  { %31 = dma.hbm_to_vmem [thread:$0]  %s509_s1, 128, %s29_s16, [#allocation6]  }
  0x13   :  { %s351_s5 = scalar_lea.hbm %s508_s0, 128 }
  0x14   :  { %p352_p8 = scmp.ne.s32.totalorder %s508_s0, %s351_s5  ;;  %p355_p9 = scmp.lt.u32.totalorder %s351_s5, %s508_s0 }
  0x16   :  { %p357_p10 = pnand %p355_p9, %p352_p8 }
  0x18   :  { %360 = shalt.err (!%p357_p10)
}
  0x19   :  { %s361_s10 = scalar_lea.vmem %s19_s18, 128  ;;  %p366_p12 = scmp.lt.s32.totalorder %s19_s18, %s19_s18 }
  0x1a   :  { %p362_p11 = scmp.ne.s32.totalorder %s19_s18, %s361_s10  ;;  %p367_p13 = scmp.lt.s32.totalorder %s361_s10, %s361_s10 }
  0x1c   :  { %p368_p0 = por %p367_p13, %p366_p12 }
  0x1e   :  { %p369_p1 = pnand %p368_p0, %p362_p11 }
  0x20   :  { %372 = shalt.err (!%p369_p1)
}
  0x21   :  { %21 = dma.hbm_to_vmem [thread:$0]  %s508_s0, 128, %s19_s18, [#allocation3]  }
  0x22   :  { %s425_s12 = smov [#allocation7]   ;;  %s373_s16 = scalar_lea.hbm %s510_s2, 2048 }
  0x23   :  { %s37_s13 = sshll.u32 %s425_s12, 4  ;;  %p374_p2 = scmp.ne.s32.totalorder %s510_s2, %s373_s16  ;;  %s38_s13 = int_to_ptr.vmem [resolvable:$true] %s37_s13 }
  0x24   :  { %p377_p3 = scmp.lt.u32.totalorder %s373_s16, %s510_s2 }
  0x26   :  { %p379_p4 = pnand %p377_p3, %p374_p2 }
  0x28   :  { %382 = shalt.err (!%p379_p4)
}
  0x29   :  { %s383_s22 = scalar_lea.vmem %s38_s13, 2048  ;;  %p388_p6 = scmp.lt.s32.totalorder %s38_s13, %s38_s13 }
  0x2a   :  { %p384_p5 = scmp.ne.s32.totalorder %s38_s13, %s383_s22  ;;  %p389_p7 = scmp.lt.s32.totalorder %s383_s22, %s383_s22 }
  0x2c   :  { %p390_p8 = por %p389_p7, %p388_p6 }
  0x2e   :  { %p391_p9 = pnand %p390_p8, %p384_p5 }
  0x30   :  { %394 = shalt.err (!%p391_p9)
}
  0x31   :  { %s426_s0 = smov 128   ;;  %s427_s18 = smov 8  }
  0x32   :  { %43 = dma.hbm_to_vmem [thread:$0]  %s510_s2, 2048, %s38_s13, [#allocation6], %s426_s0, %s426_s0, %s427_s18  }
  0x33   :  { %417 = dma.done.wait [#allocation3], 128  }
  0x34   :  { %418 = vsyncadd [#allocation3], 4294967168 }
  0x35   :  { %419 = dma.done.wait [#allocation6], 2176  }
  0x36   :  { %420 = vsyncadd [#allocation6], 4294965120  ;;  %v428_v0 = vmov 0.0|0.0   ;;  %vm429_vm0 = vmmov 0   ;;  %v430_v1 = vmov 0.0   ;;  %v56_v2 = vld [vmem:[#allocation7] sm:$0xff]  ;;  %v170_v48 = vlaneseq }
  0x37   :  { %292 = vmatprep.subr.bf16.mxu0 %v428_v0  ;;  %289 = vmatprep.mubr.msk.f32.mxu0 %vm429_vm0, %v430_v1  ;;  %v57_v3 = vld [vmem:[#allocation7 + $0x8] sm:$0xff]  ;;  %v58_v4 = vld [vmem:[#allocation7 + $0x10] sm:$0xff]  ;;  %v59_v6 = vld [vmem:[#allocation7 + $0x18] sm:$0xff] }
  0x38   :  { %v293_v5 = vpack.c.bf16 %v57_v3, %v56_v2  ;;  %v296_v7 = vpack.c.bf16 %v59_v6, %v58_v4  ;;  %v60_v8 = vld [vmem:[#allocation7 + $0x20] sm:$0xff]  ;;  %v61_v9 = vld [vmem:[#allocation7 + $0x28] sm:$0xff]  ;;  %v62_v11 = vld [vmem:[#allocation7 + $0x30] sm:$0xff]  ;;  %v171_v49 = vshrl.u32 %v170_v48, 7 }
  0x39   :  { %v299_v10 = vpack.c.bf16 %v61_v9, %v60_v8  ;;  %v63_v12 = vld [vmem:[#allocation7 + $0x38] sm:$0xff]  ;;  %v64_v14 = vld [vmem:[#allocation7 + $0x40] sm:$0xff]  ;;  %v65_v15 = vld [vmem:[#allocation7 + $0x48] sm:$0xff] }
  0x3a   :  { %294 = vmatpush3.bf16.msra.mxu0 %v293_v5  ;;  %v302_v13 = vpack.c.bf16 %v63_v12, %v62_v11  ;;  %v305_v16 = vpack.c.bf16 %v65_v15, %v64_v14  ;;  %v66_v17 = vld [vmem:[#allocation7 + $0x50] sm:$0xff]  ;;  %v67_v18 = vld [vmem:[#allocation7 + $0x58] sm:$0xff]  ;;  %v68_v20 = vld [vmem:[#allocation7 + $0x60] sm:$0xff]  ;;  %v172_v53 = vsub.s32 0, %v171_v49  ;;  %v177_v54 = vsub.s32 1, %v171_v49 }
  0x3b   :  { %295 = vmatprep.subr.bf16.mxu0 %v428_v0  ;;  %v308_v19 = vpack.c.bf16 %v67_v18, %v66_v17  ;;  %v69_v21 = vld [vmem:[#allocation7 + $0x68] sm:$0xff]  ;;  %v70_v23 = vld [vmem:[#allocation7 + $0x70] sm:$0xff]  ;;  %v71_v24 = vld [vmem:[#allocation7 + $0x78] sm:$0xff]  ;;  %v182_v59 = vsub.s32 2, %v171_v49 }
  0x3c   :  { %v311_v22 = vpack.c.bf16 %v69_v21, %v68_v20  ;;  %v314_v25 = vpack.c.bf16 %v71_v24, %v70_v23  ;;  %v55_v26 = vld [vmem:[#allocation2] sm:$0xff]  ;;  %v169_v60 = vld [vmem:[#allocation5] sm:$0xff] }
  0x3d   :  { %v142_v50 = vld [vmem:[%s511_s3] sm:$0xff]  ;;  %s431_s3 = smov [#allocation8]  }
  0x3e   :  { %297 = vmatpush3.bf16.msra.mxu0 %v296_v7  ;;  %v173_v57 = vrot.slane %v142_v50, %v172_v53  ;;  %s230_s26 = sshll.u32 %s431_s3, 4  ;;  %s231_s26 = int_to_ptr.vmem [resolvable:$true] %s230_s26 }
  0x3f   :  { %298 = vmatprep.subr.bf16.mxu0 %v428_v0  ;;  %s395_s27 = scalar_lea.vmem %s231_s26, 128  ;;  %p400_p11 = scmp.lt.s32.totalorder %s231_s26, %s231_s26 }
  0x40   :  { %v174_v62 = vmul.f32 %v173_v57, %v169_v60  ;;  %p396_p10 = scmp.ne.s32.totalorder %s231_s26, %s395_s27  ;;  %p401_p12 = scmp.lt.s32.totalorder %s395_s27, %s395_s27 }
  0x42   :  { %300 = vmatpush3.bf16.msra.mxu0 %v299_v10  ;;  %p402_p13 = por %p401_p12, %p400_p11 }
  0x43   :  { %301 = vmatprep.subr.bf16.mxu0 %v428_v0 }
  0x44   :  { %p403_p0 = pnand %p402_p13, %p396_p10 }
  0x46   :  { %303 = vmatpush3.bf16.msra.mxu0 %v302_v13 }
  0x47   :  { %304 = vmatprep.subr.bf16.mxu0 %v428_v0 }
  0x4a   :  { %306 = vmatpush3.bf16.msra.mxu0 %v305_v16 }
  0x4b   :  { %307 = vmatprep.subr.bf16.mxu0 %v428_v0 }
  0x4e   :  { %309 = vmatpush3.bf16.msra.mxu0 %v308_v19 }
  0x4f   :  { %310 = vmatprep.subr.bf16.mxu0 %v428_v0 }
  0x52   :  { %312 = vmatpush3.bf16.msra.mxu0 %v311_v22 }
  0x53   :  { %313 = vmatprep.subr.bf16.mxu0 %v428_v0 }
  0x56   :  { %315 = vmatpush3.bf16.msra.mxu0 %v314_v25  ;;  %v215_v25 = vsub.s32 3, %v171_v49 }
  0x59   :  { %290 = vmatmul.mubr.f32.vlgmr.msra.gmra.mrb[0].mxu0 %v55_v26 }
 0x12c   :  { %v138_v27 = vpop.f32.mrb[0].mxu0 }
 0x12d   :  { %v143_v28 = vrot.slane %v138_v27, 4  ;;  %v149_v29 = vmul.f32 %v138_v27, %v138_v27  ;;  %v291_v30 = vpop.f32.mrb[1].mxu0 }
 0x12f   :  { %v144_v31 = vadd.f32 %v143_v28, %v138_v27  ;;  %v150_v32 = vrot.slane %v149_v29, 4 }
 0x131   :  { %v145_v33 = vrot.slane %v144_v31, 2  ;;  %v151_v34 = vadd.f32 %v150_v32, %v149_v29  ;;  %v220_v29 = vsub.s32 4, %v171_v49 }
 0x133   :  { %v146_v35 = vadd.f32 %v145_v33, %v144_v31  ;;  %v152_v36 = vrot.slane %v151_v34, 2 }
 0x135   :  { %v147_v37 = vrot.slane %v146_v35, 1  ;;  %v153_v38 = vadd.f32 %v152_v36, %v151_v34 }
 0x137   :  { %v148_v39 = vadd.f32 %v147_v37, %v146_v35  ;;  %v154_v40 = vrot.slane %v153_v38, 1 }
 0x139   :  { %v155_v41 = vadd.f32 %v154_v40, %v153_v38  ;;  %v156_v42 = vmul.f32 0.125, %v148_v39 }
 0x13b   :  { %v157_v43 = vmul.f32 0.125, %v155_v41  ;;  %v158_v44 = vmul.f32 %v156_v42, %v156_v42 }
 0x13d   :  { %v159_v45 = vsub.f32 %v157_v43, %v158_v44 }
 0x13f   :  { %v160_v46 = vmax.f32 %v159_v45, 0.0 }
 0x141   :  { %v161_v47 = vadd.f32 1e-05, %v160_v46 }
 0x143   :  { %325 = vrsqrt.f32 %v161_v47 }
 0x14d   :  { %v326_v51 = vpop.eup %325 }
 0x14e   :  { %v163_v52 = vmul.f32 %v326_v51, %v142_v50 }
 0x150   :  { %v164_v55 = vmul.f32 %v163_v52, %v156_v42  ;;  %v178_v58 = vrot.slane %v163_v52, %v177_v54 }
 0x152   :  { %v166_v56 = vrot.slane %v164_v55, 7  ;;  %v179_v63 = vmul.f32 %v178_v58, %v138_v27 }
 0x154   :  { %v168_v61 = vsub.f32 %v142_v50, %v166_v56 }
 0x156   :  { %v183_v0 = vrot.slane %v168_v61, %v182_v59 }
 0x158   :  { %v184_v1 = vadd.f32 %v183_v0, %v179_v63 }
 0x15a   :  { %v185_v2 = vadd.f32 %v184_v1, %v174_v62 }
 0x15c   :  { %v186_v3 = vmax.f32 %v185_v2, 0.0 }
 0x15e   :  { %v187_v4 = vrot.slane %v186_v3, 4  ;;  %v193_v5 = vmul.f32 %v186_v3, %v186_v3 }
 0x160   :  { %v194_v6 = vrot.slane %v193_v5, 4  ;;  %v188_v7 = vadd.f32 %v187_v4, %v186_v3 }
 0x162   :  { %v195_v8 = vadd.f32 %v194_v6, %v193_v5  ;;  %v189_v9 = vrot.slane %v188_v7, 2 }
 0x164   :  { %v196_v10 = vrot.slane %v195_v8, 2  ;;  %v190_v11 = vadd.f32 %v189_v9, %v188_v7 }
 0x166   :  { %v191_v12 = vrot.slane %v190_v11, 1  ;;  %v197_v13 = vadd.f32 %v196_v10, %v195_v8 }
 0x168   :  { %v192_v14 = vadd.f32 %v191_v12, %v190_v11  ;;  %v198_v15 = vrot.slane %v197_v13, 1 }
 0x16a   :  { %v199_v16 = vadd.f32 %v198_v15, %v197_v13  ;;  %v200_v17 = vmul.f32 0.125, %v192_v14 }
 0x16c   :  { %v201_v18 = vmul.f32 0.125, %v199_v16  ;;  %v202_v19 = vmul.f32 %v200_v17, %v200_v17 }
 0x16e   :  { %v203_v20 = vsub.f32 %v201_v18, %v202_v19 }
 0x170   :  { %v204_v21 = vmax.f32 %v203_v20, 0.0 }
 0x172   :  { %v205_v22 = vadd.f32 1e-05, %v204_v21 }
 0x174   :  { %327 = vrsqrt.f32 %v205_v22 }
 0x17e   :  { %v328_v23 = vpop.eup %327 }
 0x17f   :  { %v207_v24 = vmul.f32 %v328_v23, %v142_v50 }
 0x181   :  { %v208_v26 = vmul.f32 %v207_v24, %v200_v17  ;;  %v216_v28 = vrot.slane %v207_v24, %v215_v25 }
 0x183   :  { %v210_v27 = vrot.slane %v208_v26, 7  ;;  %v217_v31 = vmul.f32 %v216_v28, %v186_v3 }
 0x185   :  { %v212_v30 = vsub.f32 %v142_v50, %v210_v27 }
 0x187   :  { %v221_v32 = vrot.slane %v212_v30, %v220_v29 }
 0x189   :  { %v222_v33 = vadd.f32 %v221_v32, %v217_v31 }
 0x18b   :  { %223 = vst [vmem:[#allocation8] sm:$0xff] %v222_v33 }
 0x18c   :  { %406 = shalt.err (!%p403_p0)
}
 0x18d   :  { %s407_s30 = scalar_lea.hbm %s512_s4, 128 }
 0x18e   :  { %p408_p1 = scmp.ne.s32.totalorder %s512_s4, %s407_s30  ;;  %p411_p2 = scmp.lt.u32.totalorder %s407_s30, %s512_s4 }
 0x190   :  { %p413_p3 = pnand %p411_p2, %p408_p1 }
 0x192   :  { %416 = shalt.err (!%p413_p3)
}
 0x193   :  { %233 = dma.vmem_to_hbm [thread:$0]  %s231_s26, 128, %s512_s4, [#allocation4]  }
 0x194   :  { %421 = dma.done.wait [#allocation4], 128  }
 0x195   :  { %422 = vsyncadd [#allocation4], 4294967168 }
 0x196   :  { %237 = vsyncpa [#allocation3], 1 }
 0x197   :  { %238 = vsyncpa [#allocation6], 1 }
 0x198   :  { %239 = vsyncpa [#allocation4], 1 }

</bundles_post_ra>
